<compile_context>
chip_gen: v7x
topology: tpu7x:2x2x1
jax: 0.10.0
libtpu: 0.0.40
codegen_flags: <defaults>
</compile_context>

<pallas_src>
import functools

import jax
import jax.numpy as jnp
import numpy as np
from jax.experimental import pallas as pl
from jax.experimental.pallas import tpu as pltpu


def _inclusive_scan_lanes(x):
    """Hillis-Steele inclusive prefix sum along the last (lane) axis.

    log2(Nc) shift+add passes built from static slice + concatenate (robust,
    well-supported Mosaic lowerings); XLU/VPU work, no MXU, no lax.cumsum.
    """
    S, Nc = x.shape
    shift = 1
    while shift < Nc:
        shifted = jnp.concatenate(
            [jnp.zeros((S, shift), x.dtype), x[:, : Nc - shift]], axis=1)
        x = x + shifted
        shift *= 2
    return x


def _ball_query_kernel(center_ref, pos_t_ref, out_ref, cnt_ref, *,
                       radius_sq, n_neighbor, n_total):
    """One grid step: a block of `Bb` batches x one chunk of `Nc` points.

    center_ref: (Bb, S, 3) f32      pos_t_ref: (Bb, 3, Nc) f32
    out_ref   : (Bb, S, K) i32      (resident accumulator across the N-chunk axis)
    cnt_ref   : (Bb, S, 1) i32 VMEM scratch -- running per-centroid valid count
    """
    Bb, S, _ = center_ref.shape
    Nc = pos_t_ref.shape[-1]
    K = n_neighbor
    big = jnp.int32(n_total)

    j = pl.program_id(1)
    chunk_off = j * Nc

    # Hoisted out of the unrolled batch loop (JAX does not CSE broadcast_in_dim).
    lane = jax.lax.broadcasted_iota(jnp.int32, (S, Nc), 1)   # chunk-local index
    iota_n = lane + chunk_off                                # global point index
    iota_k = jax.lax.broadcasted_iota(jnp.int32, (S, K), 1)  # output column index

    @pl.when(j == 0)
    def _():
        out_ref[...] = jnp.zeros_like(out_ref)
        cnt_ref[...] = jnp.zeros_like(cnt_ref)

    # Static unroll over the batch block: chains are independent -> cross-batch
    # ILP; the auto-tiler caps Bb (VMEM budget + soft vreg cap) so the unroll
    # never explodes register pressure.
    for b in range(Bb):
        c = center_ref[b]                      # (S, 3)
        pt = pos_t_ref[b]                      # (3, Nc)

        # Squared distance directly on the VPU: sum over 3 coords of (c-p)^2.
        d0 = c[:, 0:1] - pt[0:1, :]
        d1 = c[:, 1:2] - pt[1:2, :]
        d2 = c[:, 2:3] - pt[2:3, :]
        sq = d0 * d0 + d1 * d1 + d2 * d2       # (S, Nc) f32

        valid = sq <= radius_sq                # (S, Nc) bool
        v = valid.astype(jnp.int32)

        # Global rank of each valid point = (#valid in earlier chunks) +
        # (exclusive prefix count within this chunk).
        incl = _inclusive_scan_lanes(v)        # (S, Nc) inclusive prefix sum
        prev = cnt_ref[b]                      # (S, 1)
        rank = prev + (incl - v)               # exclusive prefix, global
        cnt_ref[b] = prev + jnp.sum(v, axis=-1, keepdims=True)

        # K independent masked reductions: column k gets the index whose global
        # rank == k (at most one per row per whole sweep), select-accumulated
        # into the resident (S, K) output block.
        acc = out_ref[b]
        for k in range(K):
            colk = jnp.sum(jnp.where(valid & (rank == k), iota_n, 0),
                           axis=-1, keepdims=True)           # (S, 1)
            acc = acc + jnp.where(iota_k == k, colk, 0)
        out_ref[b] = acc

    # Finalize on the last chunk: slots beyond the valid count become N, then
    # (matching the reference) N-slots are replaced with the first neighbor.
    @pl.when(j == pl.num_programs(1) - 1)
    def _():
        for b in range(Bb):
            cnt = cnt_ref[b]                                  # (S, 1)
            gidx = jnp.where(iota_k < cnt, out_ref[b], big)   # (S, K)
            first = gidx[:, 0:1]
            out_ref[b] = jnp.where(gidx == big, first, gidx)


def _pad_lanes(x):
    return ((x + 127) // 128) * 128


def _pad_sublanes(x):
    return ((x + 7) // 8) * 8


def _step_vmem_bytes(bb, S, Nc, K):
    """Conservative per-grid-step VMEM estimate (VMEM tile padding included)."""
    inputs = 2 * bb * (_pad_sublanes(S) * _pad_lanes(3)
                       + _pad_sublanes(3) * _pad_lanes(Nc)) * 4   # double-buffered
    outputs = 2 * bb * _pad_sublanes(S) * _pad_lanes(K) * 4
    scratch = bb * _pad_sublanes(S) * _pad_lanes(1) * 4
    temps = 8 * bb * _pad_sublanes(S) * _pad_lanes(Nc) * 4        # live (S,Nc) slabs
    return inputs + outputs + scratch + temps


def _vmem_budget_and_limit():
    """Per-generation working-set budget + matching scoped-VMEM limit."""
    try:
        cap = int(pltpu.get_tpu_info().vmem_capacity_bytes)
    except Exception:
        cap = 64 << 20  # conservative fallback (v7x physical VMEM per TC)
    budget = min(cap // 3, 40 << 20)   # ~40 MiB on 128 MiB parts, ~21 MiB on v7x
    limit = min(cap // 2, 64 << 20)    # leave headroom under physical capacity
    return budget, limit


def _is_dual_tensorcore():
    """Best-effort: does one Pallas grid span 2 TensorCores (v7x / megacore)?"""
    try:
        kind = jax.devices()[0].device_kind.lower()
    except Exception:
        return True  # conservative: keep >=2 parallel grid steps
    single_tc = ("lite" in kind) or ("v5e" in kind) or ("v6e" in kind) or ("v6 " in kind)
    return not single_tc


def _auto_tiling(B, S, N, K, *, budget_bytes, dual_tc, max_block=8):
    """Pick (batch block, N-chunk) for the grid.

    N-chunk: largest 128-multiple dividing N whose single-batch working set fits
    in ~half the budget (full-N block if N is not 128-aligned -- always legal).
    Batch block: largest divisor of B under the VMEM budget; the >=2-grid-step
    rule is applied only on dual-TC parts (both cores get batch work); a soft
    vreg-pressure cap bounds the unroll when the (S,Nc) slabs are tiny enough
    to live in registers.
    """
    if N % 128 == 0:
        Nc = 128
        for c in range(128, N + 1, 128):
            if N % c == 0 and _step_vmem_bytes(1, S, c, K) <= budget_bytes // 2:
                Nc = c
    else:
        Nc = N

    slab_vregs = (-(-S // 8)) * (-(-Nc // 128))
    best_any, best_even = 1, None
    for bb in range(1, min(B, max_block) + 1):
        if B % bb:
            continue
        if dual_tc and B >= 2 and (B // bb) < 2:
            continue  # keep >=2 parallel batch steps so both TCs get work
        if _step_vmem_bytes(bb, S, Nc, K) > budget_bytes:
            continue
        if slab_vregs <= 8 and bb > 1 and bb * 6 * slab_vregs > 48:
            continue  # register-resident slabs: cap unroll below the 64-vreg file
        best_any = bb
        if (B // bb) % 2 == 0:
            best_even = bb
    if dual_tc and best_even is not None:
        return best_even, Nc
    return best_any, Nc


def fixed_radius_nn_graph(pos, centroids, *, radius, n_neighbor, feat=None,
                          b_blk=None, n_chunk=None):
    """JAX/Pallas port of FixedRadiusNNGraph.forward.

    Returns (group_idx, src, dst, center_mask):
      group_idx  : (B, S, K) int32  -- ball-query neighbor indices (FixedRadiusNearNeighbors)
      src        : (B, S*K)  int32  -- edge sources (group_idx flattened per batch)
      dst        : (B, S*K)  int32  -- edge destinations (each centroid repeated K times)
      center_mask: (B, N)  float32  -- per-node 'center' indicator (g.ndata['center'])
    """
    B, N, _ = pos.shape
    S = centroids.shape[1]
    K = n_neighbor

    budget, vmem_limit = _vmem_budget_and_limit()
    dual_tc = _is_dual_tensorcore()
    auto_bb, auto_nc = _auto_tiling(B, S, N, K, budget_bytes=budget, dual_tc=dual_tc)
    if b_blk is None:
        b_blk = auto_bb
    if n_chunk is None:
        n_chunk = auto_nc
    assert B % b_blk == 0, "b_blk must divide the batch size"
    assert N % n_chunk == 0 and (n_chunk == N or n_chunk % 128 == 0), \
        "n_chunk must divide N and be a multiple of 128 (or equal N)"

    # index_points(pos, centroids)  (tiny gather, stays in plain JAX)
    center_pos = jnp.take_along_axis(pos, centroids[..., None], axis=1)   # (B, S, 3)
    # TODO(synk): this standalone transpose is one extra HBM pass over pos; for
    # repeated calls carry positions in (B, 3, N) layout across calls (or use
    # CompilerParams.allow_input_fusion) to fold it away.
    pos_t = jnp.transpose(pos, (0, 2, 1))                                 # (B, 3, N)

    kernel = functools.partial(
        _ball_query_kernel,
        radius_sq=float(radius) ** 2, n_neighbor=K, n_total=N)

    group_idx = pl.pallas_call(
        kernel,
        out_shape=jax.ShapeDtypeStruct((B, S, K), jnp.int32),
        grid=(B // b_blk, N // n_chunk),
        in_specs=[
            pl.BlockSpec((b_blk, S, 3), lambda i, j: (i, 0, 0)),
            pl.BlockSpec((b_blk, 3, n_chunk), lambda i, j: (i, 0, j)),
        ],
        out_specs=pl.BlockSpec((b_blk, S, K), lambda i, j: (i, 0, 0)),
        scratch_shapes=[pltpu.VMEM((b_blk, S, 1), jnp.int32)],
        compiler_params=pltpu.CompilerParams(
            dimension_semantics=("parallel", "arbitrary"),
            vmem_limit_bytes=vmem_limit),
    )(center_pos, pos_t)

    # ---- graph assembly (glue) ----
    src = group_idx.reshape(B, S * K)
    dst = jnp.repeat(centroids, K, axis=-1)                               # (B, S*K)
    center_mask = jnp.zeros((B, N), jnp.float32).at[
        jnp.arange(B)[:, None], centroids
    ].set(1.0)
    # TODO(synk): dgl.graph / dgl.batch and the torch.unique node compaction
    # produce dynamically-shaped per-batch graphs; no static-shape Pallas/JAX
    # equivalent, so edges are returned in global-node-index form instead.
    return group_idx, src, dst, center_mask


def _reference_group_idx(pos, centroids, radius, n_neighbor):
    """Pure-JAX reference of FixedRadiusNearNeighbors.forward (sort-based).

    Uses the direct (c - p)^2 distance form; the PyTorch module's
    -2ab + a^2 + b^2 formulation is the same quantity up to f32 rounding
    (accepted tolerance on radius-boundary membership).
    """
    B, N, _ = pos.shape
    center = jnp.take_along_axis(pos, centroids[..., None], axis=1)       # (B, S, 3)
    diffs = [center[:, :, d:d + 1] - pos[:, :, d][:, None, :] for d in range(3)]
    sq = diffs[0] * diffs[0] + diffs[1] * diffs[1] + diffs[2] * diffs[2]  # (B, S, N)
    gi = jnp.broadcast_to(jnp.arange(N, dtype=jnp.int32), sq.shape)
    gi = jnp.where(sq > radius ** 2, jnp.int32(N), gi)
    gi = jnp.sort(gi, axis=-1)[:, :, :n_neighbor]
    first = gi[:, :, 0:1]
    return jnp.where(gi == N, jnp.broadcast_to(first, gi.shape), gi)


if __name__ == "__main__":
    # Deterministic "module params" (from __init__): radius, n_neighbor.
    N_NEIGHBOR = 8
    B, N, S = 2, 256, 8

    key = jax.random.PRNGKey(0)
    k_pos, k_cent = jax.random.split(key)
    pos = jax.random.uniform(k_pos, (B, N, 3), dtype=jnp.float32)         # points in [0,1)^3
    centroids = jnp.stack(
        [
            jax.random.permutation(jax.random.fold_in(k_cent, i), N)[:S]
            for i in range(B)
        ]
    ).astype(jnp.int32)                                                   # (B, S)

    # radius=0.4: dense neighborhoods; radius=0.08: exercises the "fewer than K
    # neighbors" padding / first-index-replacement path.
    for radius in (0.4, 0.08):
        ref = _reference_group_idx(pos, centroids, radius, N_NEIGHBOR)

        # Auto-picked tiling (generation-aware batch block / N-chunk).
        gi, src, dst, cmask = fixed_radius_nn_graph(
            pos, centroids, radius=radius, n_neighbor=N_NEIGHBOR)
        jax.block_until_ready((gi, src, dst, cmask))
        assert np.array_equal(np.asarray(gi), np.asarray(ref)), \
            f"mismatch (auto tiling, r={radius})"

        # Forced batch-blocked + N-chunked path (2 batches/step, 2 N-chunks):
        # exercises the cross-chunk rank/count carry and the batch unroll.
        gi2, _, _, _ = fixed_radius_nn_graph(
            pos, centroids, radius=radius, n_neighbor=N_NEIGHBOR,
            b_blk=2, n_chunk=128)
        jax.block_until_ready(gi2)
        assert np.array_equal(np.asarray(gi2), np.asarray(ref)), \
            f"mismatch (b_blk=2, n_chunk=128, r={radius})"

    print("KERNEL_OK")
</pallas_src>

<mosaic_0001>
module attributes {stable_mosaic.version = 11 : i64} {
  func.func @_ball_query_kernel(%arg0: i32, %arg1: i32, %arg2: memref<1x8x3xf32, #tpu.memory_space<vmem>>, %arg3: memref<1x3x256xf32, #tpu.memory_space<vmem>>, %arg4: memref<1x8x8xi32, #tpu.memory_space<vmem>>, %arg5: memref<1x8x1xi32, #tpu.memory_space<vmem>>) attributes {dimension_semantics = [#tpu.dimension_semantics<parallel>, #tpu.dimension_semantics<arbitrary>], iteration_bounds = array<i64: 2, 1>, scalar_prefetch = 0 : i64, scratch_operands = 1 : i64, tpu.core_type = #tpu.core_type<tc>, window_params = [{transform_indices = @transform_0, window_bounds = array<i64: 1, 8, 3>}, {transform_indices = @transform_1, window_bounds = array<i64: 1, 3, 256>}, {transform_indices = @transform_2, window_bounds = array<i64: 1, 8, 8>}]} {
    %c256_i32 = arith.constant 256 : i32
    %0 = arith.muli %arg1, %c256_i32 : i32
    %1 = tpu.iota {dimensions = array<i32: 1>} : vector<8x256xi32>
    %2 = vector.broadcast %0 : i32 to vector<8x256xi32>
    %3 = arith.addi %1, %2 : vector<8x256xi32>
    %4 = tpu.iota {dimensions = array<i32: 1>} : vector<8x8xi32>
    %c0_i32 = arith.constant 0 : i32
    %5 = arith.cmpi eq, %arg1, %c0_i32 : i32
    %6 = arith.extui %5 : i1 to i32
    %c0_i32_0 = arith.constant 0 : i32
    %7 = arith.cmpi ne, %6, %c0_i32_0 : i32
    scf.if %7 {
      %c0_i32_63 = arith.constant 0 : i32
      %198 = vector.broadcast %c0_i32_63 : i32 to vector<1x8x8xi32>
      %c0_64 = arith.constant 0 : index
      %c0_65 = arith.constant 0 : index
      %c0_66 = arith.constant 0 : index
      %199 = vector.load %arg4[%c0_64, %c0_65, %c0_66] : memref<1x8x8xi32, #tpu.memory_space<vmem>>, vector<1x8x8xi32>
      tpu.vector_store %arg4[%c0_64, %c0_65, %c0_66], %198 {strides = array<i32>} : memref<1x8x8xi32, #tpu.memory_space<vmem>>, vector<1x8x8xi32>,
      %c0_i32_67 = arith.constant 0 : i32
      %200 = vector.broadcast %c0_i32_67 : i32 to vector<1x8x1xi32>
      %c0_68 = arith.constant 0 : index
      %c0_69 = arith.constant 0 : index
      %c0_70 = arith.constant 0 : index
      %201 = vector.load %arg5[%c0_68, %c0_69, %c0_70] : memref<1x8x1xi32, #tpu.memory_space<vmem>>, vector<1x8x1xi32>
      tpu.vector_store %arg5[%c0_68, %c0_69, %c0_70], %200 {strides = array<i32>} : memref<1x8x1xi32, #tpu.memory_space<vmem>>, vector<1x8x1xi32>,
    } else {
    }
    %c0 = arith.constant 0 : index
    %c0_1 = arith.constant 0 : index
    %c0_2 = arith.constant 0 : index
    %8 = vector.load %arg2[%c0, %c0_1, %c0_2] : memref<1x8x3xf32, #tpu.memory_space<vmem>>, vector<1x8x3xf32>
    %9 = vector.shape_cast %8 : vector<1x8x3xf32> to vector<8x3xf32>
    %c0_3 = arith.constant 0 : index
    %c0_4 = arith.constant 0 : index
    %c0_5 = arith.constant 0 : index
    %10 = vector.load %arg3[%c0_3, %c0_4, %c0_5] : memref<1x3x256xf32, #tpu.memory_space<vmem>>, vector<1x3x256xf32>
    %11 = vector.shape_cast %10 : vector<1x3x256xf32> to vector<3x256xf32>
    %12 = vector.extract_strided_slice %9 {offsets = [0, 0], sizes = [8, 1], strides = [1, 1]} : vector<8x3xf32> to vector<8x1xf32>
    %13 = vector.extract_strided_slice %11 {offsets = [0, 0], sizes = [1, 256], strides = [1, 1]} : vector<3x256xf32> to vector<1x256xf32>
    %14 = vector.broadcast %12 : vector<8x1xf32> to vector<8x256xf32>
    %15 = vector.broadcast %13 : vector<1x256xf32> to vector<8x256xf32>
    %16 = arith.subf %14, %15 : vector<8x256xf32>
    %17 = vector.extract_strided_slice %9 {offsets = [0, 1], sizes = [8, 1], strides = [1, 1]} : vector<8x3xf32> to vector<8x1xf32>
    %18 = vector.extract_strided_slice %11 {offsets = [1, 0], sizes = [1, 256], strides = [1, 1]} : vector<3x256xf32> to vector<1x256xf32>
    %19 = vector.broadcast %17 : vector<8x1xf32> to vector<8x256xf32>
    %20 = vector.broadcast %18 : vector<1x256xf32> to vector<8x256xf32>
    %21 = arith.subf %19, %20 : vector<8x256xf32>
    %22 = vector.extract_strided_slice %9 {offsets = [0, 2], sizes = [8, 1], strides = [1, 1]} : vector<8x3xf32> to vector<8x1xf32>
    %23 = vector.extract_strided_slice %11 {offsets = [2, 0], sizes = [1, 256], strides = [1, 1]} : vector<3x256xf32> to vector<1x256xf32>
    %24 = vector.broadcast %22 : vector<8x1xf32> to vector<8x256xf32>
    %25 = vector.broadcast %23 : vector<1x256xf32> to vector<8x256xf32>
    %26 = arith.subf %24, %25 : vector<8x256xf32>
    %27 = arith.mulf %16, %16 : vector<8x256xf32>
    %28 = arith.mulf %21, %21 : vector<8x256xf32>
    %29 = arith.addf %27, %28 : vector<8x256xf32>
    %30 = arith.mulf %26, %26 : vector<8x256xf32>
    %31 = arith.addf %29, %30 : vector<8x256xf32>
    %cst = arith.constant 1.600000e-01 : f32
    %32 = vector.broadcast %cst : f32 to vector<8x256xf32>
    %33 = arith.cmpf ole, %31, %32 : vector<8x256xf32>
    %34 = arith.extui %33 : vector<8x256xi1> to vector<8x256xi32>
    %c0_i32_6 = arith.constant 0 : i32
    %35 = vector.broadcast %c0_i32_6 : i32 to vector<8x1xi32>
    %36 = vector.extract_strided_slice %34 {offsets = [0, 0], sizes = [8, 255], strides = [1, 1]} : vector<8x256xi32> to vector<8x255xi32>
    %37 = tpu.concatenate %35, %36 in 1 : vector<8x1xi32>, vector<8x255xi32> -> vector<8x256xi32>
    %38 = arith.addi %34, %37 : vector<8x256xi32>
    %c0_i32_7 = arith.constant 0 : i32
    %39 = vector.broadcast %c0_i32_7 : i32 to vector<8x2xi32>
    %40 = vector.extract_strided_slice %38 {offsets = [0, 0], sizes = [8, 254], strides = [1, 1]} : vector<8x256xi32> to vector<8x254xi32>
    %41 = tpu.concatenate %39, %40 in 1 : vector<8x2xi32>, vector<8x254xi32> -> vector<8x256xi32>
    %42 = arith.addi %38, %41 : vector<8x256xi32>
    %c0_i32_8 = arith.constant 0 : i32
    %43 = vector.broadcast %c0_i32_8 : i32 to vector<8x4xi32>
    %44 = vector.extract_strided_slice %42 {offsets = [0, 0], sizes = [8, 252], strides = [1, 1]} : vector<8x256xi32> to vector<8x252xi32>
    %45 = tpu.concatenate %43, %44 in 1 : vector<8x4xi32>, vector<8x252xi32> -> vector<8x256xi32>
    %46 = arith.addi %42, %45 : vector<8x256xi32>
    %c0_i32_9 = arith.constant 0 : i32
    %47 = vector.broadcast %c0_i32_9 : i32 to vector<8x8xi32>
    %48 = vector.extract_strided_slice %46 {offsets = [0, 0], sizes = [8, 248], strides = [1, 1]} : vector<8x256xi32> to vector<8x248xi32>
    %49 = tpu.concatenate %47, %48 in 1 : vector<8x8xi32>, vector<8x248xi32> -> vector<8x256xi32>
    %50 = arith.addi %46, %49 : vector<8x256xi32>
    %c0_i32_10 = arith.constant 0 : i32
    %51 = vector.broadcast %c0_i32_10 : i32 to vector<8x16xi32>
    %52 = vector.extract_strided_slice %50 {offsets = [0, 0], sizes = [8, 240], strides = [1, 1]} : vector<8x256xi32> to vector<8x240xi32>
    %53 = tpu.concatenate %51, %52 in 1 : vector<8x16xi32>, vector<8x240xi32> -> vector<8x256xi32>
    %54 = arith.addi %50, %53 : vector<8x256xi32>
    %c0_i32_11 = arith.constant 0 : i32
    %55 = vector.broadcast %c0_i32_11 : i32 to vector<8x32xi32>
    %56 = vector.extract_strided_slice %54 {offsets = [0, 0], sizes = [8, 224], strides = [1, 1]} : vector<8x256xi32> to vector<8x224xi32>
    %57 = tpu.concatenate %55, %56 in 1 : vector<8x32xi32>, vector<8x224xi32> -> vector<8x256xi32>
    %58 = arith.addi %54, %57 : vector<8x256xi32>
    %c0_i32_12 = arith.constant 0 : i32
    %59 = vector.broadcast %c0_i32_12 : i32 to vector<8x64xi32>
    %60 = vector.extract_strided_slice %58 {offsets = [0, 0], sizes = [8, 192], strides = [1, 1]} : vector<8x256xi32> to vector<8x192xi32>
    %61 = tpu.concatenate %59, %60 in 1 : vector<8x64xi32>, vector<8x192xi32> -> vector<8x256xi32>
    %62 = arith.addi %58, %61 : vector<8x256xi32>
    %c0_i32_13 = arith.constant 0 : i32
    %63 = vector.broadcast %c0_i32_13 : i32 to vector<8x128xi32>
    %64 = vector.extract_strided_slice %62 {offsets = [0, 0], sizes = [8, 128], strides = [1, 1]} : vector<8x256xi32> to vector<8x128xi32>
    %65 = tpu.concatenate %63, %64 in 1 : vector<8x128xi32>, vector<8x128xi32> -> vector<8x256xi32>
    %66 = arith.addi %62, %65 : vector<8x256xi32>
    %c0_14 = arith.constant 0 : index
    %c0_15 = arith.constant 0 : index
    %c0_16 = arith.constant 0 : index
    %67 = vector.load %arg5[%c0_14, %c0_15, %c0_16] : memref<1x8x1xi32, #tpu.memory_space<vmem>>, vector<1x8x1xi32>
    %68 = vector.shape_cast %67 : vector<1x8x1xi32> to vector<8x1xi32>
    %69 = arith.subi %66, %34 : vector<8x256xi32>
    %70 = vector.broadcast %68 : vector<8x1xi32> to vector<8x256xi32>
    %71 = arith.addi %70, %69 : vector<8x256xi32>
    %cst_17 = arith.constant dense<0> : vector<8xi32>
    %72 = vector.multi_reduction <add>, %34, %cst_17 [1] : vector<8x256xi32> to vector<8xi32>
    %73 = vector.shape_cast %72 : vector<8xi32> to vector<8x1xi32>
    %74 = arith.addi %68, %73 : vector<8x1xi32>
    %c0_18 = arith.constant 0 : index
    %c0_19 = arith.constant 0 : index
    %c0_20 = arith.constant 0 : index
    %75 = vector.load %arg5[%c0_18, %c0_19, %c0_20] : memref<1x8x1xi32, #tpu.memory_space<vmem>>, vector<1x8x1xi32>
    %76 = vector.shape_cast %75 : vector<1x8x1xi32> to vector<8x1xi32>
    %77 = vector.shape_cast %74 : vector<8x1xi32> to vector<1x8x1xi32>
    tpu.vector_store %arg5[%c0_18, %c0_19, %c0_20], %77 {strides = array<i32>} : memref<1x8x1xi32, #tpu.memory_space<vmem>>, vector<1x8x1xi32>,
    %c0_21 = arith.constant 0 : index
    %c0_22 = arith.constant 0 : index
    %c0_23 = arith.constant 0 : index
    %78 = vector.load %arg4[%c0_21, %c0_22, %c0_23] : memref<1x8x8xi32, #tpu.memory_space<vmem>>, vector<1x8x8xi32>
    %79 = vector.shape_cast %78 : vector<1x8x8xi32> to vector<8x8xi32>
    %c0_i32_24 = arith.constant 0 : i32
    %80 = vector.broadcast %c0_i32_24 : i32 to vector<8x256xi32>
    %81 = arith.cmpi eq, %71, %80 : vector<8x256xi32>
    %82 = arith.andi %33, %81 : vector<8x256xi1>
    %c0_i32_25 = arith.constant 0 : i32
    %83 = vector.broadcast %c0_i32_25 : i32 to vector<8x256xi32>
    %84 = arith.select %82, %3, %83 : vector<8x256xi1>, vector<8x256xi32>
    %cst_26 = arith.constant dense<0> : vector<8xi32>
    %85 = vector.multi_reduction <add>, %84, %cst_26 [1] : vector<8x256xi32> to vector<8xi32>
    %86 = vector.shape_cast %85 : vector<8xi32> to vector<8x1xi32>
    %c0_i32_27 = arith.constant 0 : i32
    %87 = vector.broadcast %c0_i32_27 : i32 to vector<8x8xi32>
    %88 = arith.cmpi eq, %4, %87 : vector<8x8xi32>
    %c0_i32_28 = arith.constant 0 : i32
    %89 = vector.shape_cast %86 : vector<8x1xi32> to vector<8x1xi32>
    %90 = vector.broadcast %89 : vector<8x1xi32> to vector<8x8xi32>
    %91 = vector.broadcast %c0_i32_28 : i32 to vector<8x8xi32>
    %92 = arith.select %88, %90, %91 : vector<8x8xi1>, vector<8x8xi32>
    %93 = arith.addi %79, %92 : vector<8x8xi32>
    %c1_i32 = arith.constant 1 : i32
    %94 = vector.broadcast %c1_i32 : i32 to vector<8x256xi32>
    %95 = arith.cmpi eq, %71, %94 : vector<8x256xi32>
    %96 = arith.andi %33, %95 : vector<8x256xi1>
    %c0_i32_29 = arith.constant 0 : i32
    %97 = vector.broadcast %c0_i32_29 : i32 to vector<8x256xi32>
    %98 = arith.select %96, %3, %97 : vector<8x256xi1>, vector<8x256xi32>
    %cst_30 = arith.constant dense<0> : vector<8xi32>
    %99 = vector.multi_reduction <add>, %98, %cst_30 [1] : vector<8x256xi32> to vector<8xi32>
    %100 = vector.shape_cast %99 : vector<8xi32> to vector<8x1xi32>
    %c1_i32_31 = arith.constant 1 : i32
    %101 = vector.broadcast %c1_i32_31 : i32 to vector<8x8xi32>
    %102 = arith.cmpi eq, %4, %101 : vector<8x8xi32>
    %c0_i32_32 = arith.constant 0 : i32
    %103 = vector.shape_cast %100 : vector<8x1xi32> to vector<8x1xi32>
    %104 = vector.broadcast %103 : vector<8x1xi32> to vector<8x8xi32>
    %105 = vector.broadcast %c0_i32_32 : i32 to vector<8x8xi32>
    %106 = arith.select %102, %104, %105 : vector<8x8xi1>, vector<8x8xi32>
    %107 = arith.addi %93, %106 : vector<8x8xi32>
    %c2_i32 = arith.constant 2 : i32
    %108 = vector.broadcast %c2_i32 : i32 to vector<8x256xi32>
    %109 = arith.cmpi eq, %71, %108 : vector<8x256xi32>
    %110 = arith.andi %33, %109 : vector<8x256xi1>
    %c0_i32_33 = arith.constant 0 : i32
    %111 = vector.broadcast %c0_i32_33 : i32 to vector<8x256xi32>
    %112 = arith.select %110, %3, %111 : vector<8x256xi1>, vector<8x256xi32>
    %cst_34 = arith.constant dense<0> : vector<8xi32>
    %113 = vector.multi_reduction <add>, %112, %cst_34 [1] : vector<8x256xi32> to vector<8xi32>
    %114 = vector.shape_cast %113 : vector<8xi32> to vector<8x1xi32>
    %c2_i32_35 = arith.constant 2 : i32
    %115 = vector.broadcast %c2_i32_35 : i32 to vector<8x8xi32>
    %116 = arith.cmpi eq, %4, %115 : vector<8x8xi32>
    %c0_i32_36 = arith.constant 0 : i32
    %117 = vector.shape_cast %114 : vector<8x1xi32> to vector<8x1xi32>
    %118 = vector.broadcast %117 : vector<8x1xi32> to vector<8x8xi32>
    %119 = vector.broadcast %c0_i32_36 : i32 to vector<8x8xi32>
    %120 = arith.select %116, %118, %119 : vector<8x8xi1>, vector<8x8xi32>
    %121 = arith.addi %107, %120 : vector<8x8xi32>
    %c3_i32 = arith.constant 3 : i32
    %122 = vector.broadcast %c3_i32 : i32 to vector<8x256xi32>
    %123 = arith.cmpi eq, %71, %122 : vector<8x256xi32>
    %124 = arith.andi %33, %123 : vector<8x256xi1>
    %c0_i32_37 = arith.constant 0 : i32
    %125 = vector.broadcast %c0_i32_37 : i32 to vector<8x256xi32>
    %126 = arith.select %124, %3, %125 : vector<8x256xi1>, vector<8x256xi32>
    %cst_38 = arith.constant dense<0> : vector<8xi32>
    %127 = vector.multi_reduction <add>, %126, %cst_38 [1] : vector<8x256xi32> to vector<8xi32>
    %128 = vector.shape_cast %127 : vector<8xi32> to vector<8x1xi32>
    %c3_i32_39 = arith.constant 3 : i32
    %129 = vector.broadcast %c3_i32_39 : i32 to vector<8x8xi32>
    %130 = arith.cmpi eq, %4, %129 : vector<8x8xi32>
    %c0_i32_40 = arith.constant 0 : i32
    %131 = vector.shape_cast %128 : vector<8x1xi32> to vector<8x1xi32>
    %132 = vector.broadcast %131 : vector<8x1xi32> to vector<8x8xi32>
    %133 = vector.broadcast %c0_i32_40 : i32 to vector<8x8xi32>
    %134 = arith.select %130, %132, %133 : vector<8x8xi1>, vector<8x8xi32>
    %135 = arith.addi %121, %134 : vector<8x8xi32>
    %c4_i32 = arith.constant 4 : i32
    %136 = vector.broadcast %c4_i32 : i32 to vector<8x256xi32>
    %137 = arith.cmpi eq, %71, %136 : vector<8x256xi32>
    %138 = arith.andi %33, %137 : vector<8x256xi1>
    %c0_i32_41 = arith.constant 0 : i32
    %139 = vector.broadcast %c0_i32_41 : i32 to vector<8x256xi32>
    %140 = arith.select %138, %3, %139 : vector<8x256xi1>, vector<8x256xi32>
    %cst_42 = arith.constant dense<0> : vector<8xi32>
    %141 = vector.multi_reduction <add>, %140, %cst_42 [1] : vector<8x256xi32> to vector<8xi32>
    %142 = vector.shape_cast %141 : vector<8xi32> to vector<8x1xi32>
    %c4_i32_43 = arith.constant 4 : i32
    %143 = vector.broadcast %c4_i32_43 : i32 to vector<8x8xi32>
    %144 = arith.cmpi eq, %4, %143 : vector<8x8xi32>
    %c0_i32_44 = arith.constant 0 : i32
    %145 = vector.shape_cast %142 : vector<8x1xi32> to vector<8x1xi32>
    %146 = vector.broadcast %145 : vector<8x1xi32> to vector<8x8xi32>
    %147 = vector.broadcast %c0_i32_44 : i32 to vector<8x8xi32>
    %148 = arith.select %144, %146, %147 : vector<8x8xi1>, vector<8x8xi32>
    %149 = arith.addi %135, %148 : vector<8x8xi32>
    %c5_i32 = arith.constant 5 : i32
    %150 = vector.broadcast %c5_i32 : i32 to vector<8x256xi32>
    %151 = arith.cmpi eq, %71, %150 : vector<8x256xi32>
    %152 = arith.andi %33, %151 : vector<8x256xi1>
    %c0_i32_45 = arith.constant 0 : i32
    %153 = vector.broadcast %c0_i32_45 : i32 to vector<8x256xi32>
    %154 = arith.select %152, %3, %153 : vector<8x256xi1>, vector<8x256xi32>
    %cst_46 = arith.constant dense<0> : vector<8xi32>
    %155 = vector.multi_reduction <add>, %154, %cst_46 [1] : vector<8x256xi32> to vector<8xi32>
    %156 = vector.shape_cast %155 : vector<8xi32> to vector<8x1xi32>
    %c5_i32_47 = arith.constant 5 : i32
    %157 = vector.broadcast %c5_i32_47 : i32 to vector<8x8xi32>
    %158 = arith.cmpi eq, %4, %157 : vector<8x8xi32>
    %c0_i32_48 = arith.constant 0 : i32
    %159 = vector.shape_cast %156 : vector<8x1xi32> to vector<8x1xi32>
    %160 = vector.broadcast %159 : vector<8x1xi32> to vector<8x8xi32>
    %161 = vector.broadcast %c0_i32_48 : i32 to vector<8x8xi32>
    %162 = arith.select %158, %160, %161 : vector<8x8xi1>, vector<8x8xi32>
    %163 = arith.addi %149, %162 : vector<8x8xi32>
    %c6_i32 = arith.constant 6 : i32
    %164 = vector.broadcast %c6_i32 : i32 to vector<8x256xi32>
    %165 = arith.cmpi eq, %71, %164 : vector<8x256xi32>
    %166 = arith.andi %33, %165 : vector<8x256xi1>
    %c0_i32_49 = arith.constant 0 : i32
    %167 = vector.broadcast %c0_i32_49 : i32 to vector<8x256xi32>
    %168 = arith.select %166, %3, %167 : vector<8x256xi1>, vector<8x256xi32>
    %cst_50 = arith.constant dense<0> : vector<8xi32>
    %169 = vector.multi_reduction <add>, %168, %cst_50 [1] : vector<8x256xi32> to vector<8xi32>
    %170 = vector.shape_cast %169 : vector<8xi32> to vector<8x1xi32>
    %c6_i32_51 = arith.constant 6 : i32
    %171 = vector.broadcast %c6_i32_51 : i32 to vector<8x8xi32>
    %172 = arith.cmpi eq, %4, %171 : vector<8x8xi32>
    %c0_i32_52 = arith.constant 0 : i32
    %173 = vector.shape_cast %170 : vector<8x1xi32> to vector<8x1xi32>
    %174 = vector.broadcast %173 : vector<8x1xi32> to vector<8x8xi32>
    %175 = vector.broadcast %c0_i32_52 : i32 to vector<8x8xi32>
    %176 = arith.select %172, %174, %175 : vector<8x8xi1>, vector<8x8xi32>
    %177 = arith.addi %163, %176 : vector<8x8xi32>
    %c7_i32 = arith.constant 7 : i32
    %178 = vector.broadcast %c7_i32 : i32 to vector<8x256xi32>
    %179 = arith.cmpi eq, %71, %178 : vector<8x256xi32>
    %180 = arith.andi %33, %179 : vector<8x256xi1>
    %c0_i32_53 = arith.constant 0 : i32
    %181 = vector.broadcast %c0_i32_53 : i32 to vector<8x256xi32>
    %182 = arith.select %180, %3, %181 : vector<8x256xi1>, vector<8x256xi32>
    %cst_54 = arith.constant dense<0> : vector<8xi32>
    %183 = vector.multi_reduction <add>, %182, %cst_54 [1] : vector<8x256xi32> to vector<8xi32>
    %184 = vector.shape_cast %183 : vector<8xi32> to vector<8x1xi32>
    %c7_i32_55 = arith.constant 7 : i32
    %185 = vector.broadcast %c7_i32_55 : i32 to vector<8x8xi32>
    %186 = arith.cmpi eq, %4, %185 : vector<8x8xi32>
    %c0_i32_56 = arith.constant 0 : i32
    %187 = vector.shape_cast %184 : vector<8x1xi32> to vector<8x1xi32>
    %188 = vector.broadcast %187 : vector<8x1xi32> to vector<8x8xi32>
    %189 = vector.broadcast %c0_i32_56 : i32 to vector<8x8xi32>
    %190 = arith.select %186, %188, %189 : vector<8x8xi1>, vector<8x8xi32>
    %191 = arith.addi %177, %190 : vector<8x8xi32>
    %c0_57 = arith.constant 0 : index
    %c0_58 = arith.constant 0 : index
    %c0_59 = arith.constant 0 : index
    %192 = vector.load %arg4[%c0_57, %c0_58, %c0_59] : memref<1x8x8xi32, #tpu.memory_space<vmem>>, vector<1x8x8xi32>
    %193 = vector.shape_cast %192 : vector<1x8x8xi32> to vector<8x8xi32>
    %194 = vector.shape_cast %191 : vector<8x8xi32> to vector<1x8x8xi32>
    tpu.vector_store %arg4[%c0_57, %c0_58, %c0_59], %194 {strides = array<i32>} : memref<1x8x8xi32, #tpu.memory_space<vmem>>, vector<1x8x8xi32>,
    %c0_i32_60 = arith.constant 0 : i32
    %195 = arith.cmpi eq, %arg1, %c0_i32_60 : i32
    %196 = arith.extui %195 : i1 to i32
    %c256_i32_61 = arith.constant 256 : i32
    %c0_i32_62 = arith.constant 0 : i32
    %197 = arith.cmpi ne, %196, %c0_i32_62 : i32
    scf.if %197 {
      %c0_63 = arith.constant 0 : index
      %c0_64 = arith.constant 0 : index
      %c0_65 = arith.constant 0 : index
      %198 = vector.load %arg5[%c0_63, %c0_64, %c0_65] : memref<1x8x1xi32, #tpu.memory_space<vmem>>, vector<1x8x1xi32>
      %199 = vector.shape_cast %198 : vector<1x8x1xi32> to vector<8x1xi32>
      %200 = vector.broadcast %199 : vector<8x1xi32> to vector<8x8xi32>
      %201 = arith.cmpi slt, %4, %200 : vector<8x8xi32>
      %c0_66 = arith.constant 0 : index
      %c0_67 = arith.constant 0 : index
      %c0_68 = arith.constant 0 : index
      %202 = vector.load %arg4[%c0_66, %c0_67, %c0_68] : memref<1x8x8xi32, #tpu.memory_space<vmem>>, vector<1x8x8xi32>
      %203 = vector.shape_cast %202 : vector<1x8x8xi32> to vector<8x8xi32>
      %204 = vector.broadcast %c256_i32_61 : i32 to vector<8x8xi32>
      %205 = arith.select %201, %203, %204 : vector<8x8xi1>, vector<8x8xi32>
      %206 = vector.extract_strided_slice %205 {offsets = [0, 0], sizes = [8, 1], strides = [1, 1]} : vector<8x8xi32> to vector<8x1xi32>
      %207 = vector.broadcast %c256_i32_61 : i32 to vector<8x8xi32>
      %208 = arith.cmpi eq, %205, %207 : vector<8x8xi32>
      %209 = vector.shape_cast %206 : vector<8x1xi32> to vector<8x1xi32>
      %210 = vector.broadcast %209 : vector<8x1xi32> to vector<8x8xi32>
      %211 = arith.select %208, %210, %205 : vector<8x8xi1>, vector<8x8xi32>
      %c0_69 = arith.constant 0 : index
      %c0_70 = arith.constant 0 : index
      %c0_71 = arith.constant 0 : index
      %212 = vector.load %arg4[%c0_69, %c0_70, %c0_71] : memref<1x8x8xi32, #tpu.memory_space<vmem>>, vector<1x8x8xi32>
      %213 = vector.shape_cast %212 : vector<1x8x8xi32> to vector<8x8xi32>
      %214 = vector.shape_cast %211 : vector<8x8xi32> to vector<1x8x8xi32>
      tpu.vector_store %arg4[%c0_69, %c0_70, %c0_71], %214 {strides = array<i32>} : memref<1x8x8xi32, #tpu.memory_space<vmem>>, vector<1x8x8xi32>,
    } else {
    }
    return
  }
  func.func @transform_0(%arg0: i32, %arg1: i32) -> (i32, i32, i32) {
    %c0_i32 = arith.constant 0 : i32
    %c0_i32_0 = arith.constant 0 : i32
    %c0_i32_1 = arith.constant 0 : i32
    return %arg0, %c0_i32, %c0_i32_0 : i32, i32, i32
  }
  func.func @transform_1(%arg0: i32, %arg1: i32) -> (i32, i32, i32) {
    %c0_i32 = arith.constant 0 : i32
    %c0_i32_0 = arith.constant 0 : i32
    return %arg0, %c0_i32, %arg1 : i32, i32, i32
  }
  func.func @transform_2(%arg0: i32, %arg1: i32) -> (i32, i32, i32) {
    %c0_i32 = arith.constant 0 : i32
    %c0_i32_0 = arith.constant 0 : i32
    %c0_i32_1 = arith.constant 0 : i32
    return %arg0, %c0_i32, %c0_i32_0 : i32, i32, i32
  }
}

</mosaic_0001>

<bundles_post_ra>
// kernel: tpu_custom_call.1
= control target key start
LH: loop header
LB: loop body
LE: loop exit
PB: predicated region body
PF: predicated region fallthrough
CT: control target
= control target key end

     0   :  { %7 = vsyncpa [#allocation4], 0  ;;  %s1177_s0 = inlined_call_operand.vmem [shape: f32[2,8,3], index: 0, kind: input, shape index: {}]   ;;  %s1178_s1 = inlined_call_operand.vmem [shape: f32[2,3,256], index: 1, kind: input, shape index: {}]   ;;  %s1179_s2 = inlined_call_operand.hbm [shape: s32[2,8,8], index: 2, kind: output, shape index: {}]  }
   0x1   :  { %9 = vsyncpa [#allocation4 + $0x1], 0  ;;  %s862_s9 = smov 0   ;;  %s864_s10 = smov 0  }
   0x2   :  { %s866_s11 = smov 0   ;;  %s868_s12 = smov 0  }
   0x3   :  { %s870_s13 = smov 0   ;;  %s872_s14 = smov 0  }
   0x4 LB: > { %s672_s15 = sadd.s32 4294967295, %s834_s14   ;;  %s673_s16 = sadd.s32 4294967294, %s834_s14   ;;  %s834_s14 = sphi %s872_s14, %s15_s14   ;;  %s830_s13 = sphi %s870_s13, %s1206_s13   ;;  %s826_s12 = sphi %s868_s12, %s1205_s12   ;;  %s822_s11 = sphi %s866_s11, %s1204_s11   ;;  %s818_s10 = sphi %s864_s10, %s1203_s10   ;;  %s814_s9 = sphi %s862_s9, %s1202_s9  }
   0x5   : > { %s27_s17 = sadd.s32 1, %s830_s13  ;;  %s88_s18 = sadd.s32 1, %s822_s11 }
   0x6   : > { %p29_p0 = scmp.ge.s32.totalorder %s27_s17, 2  ;;  %p98_p1 = scmp.ne.s32.totalorder %s822_s11, %s818_s10 }
   0x7   : > { %p99_p2 = scmp.eq.s32.totalorder %s672_s15, 1  ;;  %p104_p3 = scmp.ne.s32.totalorder %s818_s10, %s814_s9 }
   0x8   : > { %s1208_s17 = smov (%p29_p0, %s27_s17), 0  ;;  %p105_p5 = scmp.eq.s32.totalorder %s673_s16, 1 }
   0x9   : > { %p902_p4 = por %p99_p2, %p98_p1  ;;  %s85_s20 = ssub.s32 %s830_s13, %s1208_s17 }
   0xa   : > { %p676_p6 = scmp.ge.s32.totalorder %s834_s14, 1  ;;  %p86_p7 = scmp.eq.s32.totalorder %s85_s20, 0 }
   0xb   : > { %p909_p8 = por %p105_p5, %p104_p3  ;;  %p143_p9 = scmp.lt.s32.totalorder %s834_s14, 3 }
   0xc   : > { %s915_s22 = scalar_select %p86_p7, %s822_s11, %s88_s18  }
   0xd   : > { %p144_p10 = pnand %p676_p6, %p143_p9 }
   0xe   : > { %p173_p11 = scmp.lt.s32.totalorder (!%p144_p10), %s826_s12, 1  ;;  %v836_v0 = vmov (!%p144_p10), 0   ;;  %v837_v1 = vmov (!%p144_p10), 2   ;;  %v838_v3 = vmov (!%p144_p10), 1   ;;  %vm200_vm0 = vcmask (!%p144_p10), 7168   ;;  %s839_s3 = smov (!%p144_p10), 1  }
   0xf   : > { %147 = sbr.rel (%p144_p10) target bundleno = 1353 (0x549), region = 28  ;;  %751 = vset.pattern.permute.xlu0 (!%p144_p10), %v836_v0  ;;  %753 = vset.pattern.permute.xlu1 (!%p144_p10), %v837_v1  ;;  %201 = vst.msk [vmem:[#allocation2] sm:$0xff] (!%p144_p10), %vm200_vm0, %v836_v0  ;;  %v188_v4 = vlaneseq (!%p144_p10)  ;;  %s840_s4 = smov (!%p144_p10), 2   ;;  %vm305_vm3 = vcmask (!%p144_p10), 15360   ;;  %vm314_vm4 = vcmask (!%p144_p10), 31744   ;;  %vm198_vm5 = vcmask (!%p144_p10), 64512  }
  0x10   : > { %s841_s5 = smov (!%p144_p10), 4   ;;  %s842_s6 = smov (!%p144_p10), 8   ;;  %vm332_vm6 = vcmask (!%p144_p10), 130048   ;;  %vm341_vm7 = vcmask (!%p144_p10), 261120   ;;  %vm350_vm8 = vcmask (!%p144_p10), 523264  }
  0x11   : > { %v211_v5 = vshrl.u32 (!%p144_p10), %v188_v4, 7  ;;  %s843_s7 = smov (!%p144_p10), 16   ;;  %s844_s8 = smov (!%p144_p10), 32  }
  0x12   : > { %s845_s15 = smov (!%p144_p10), 64   ;;  %s170_s16 = sand.u32 (!%p144_p10), 1, %s818_s10  }
  0x13   : > { %v212_v6 = vsub.s32 (!%p144_p10), 0, %v211_v5  ;;  %v216_v7 = vsub.s32 (!%p144_p10), 4, %v211_v5  ;;  %v260_v9 = vsub.s32 (!%p144_p10), 2, %v211_v5  ;;  %v264_v10 = vsub.s32 (!%p144_p10), 6, %v211_v5  ;;  %s677_s18 = sshll.u32 (!%p144_p10), %s170_s16, 3  ;;  %s574_s28 = scalar_lea.sflag (!%p144_p10), [#allocation4], %s170_s16 }
  0x14   : > { %v236_v11 = vsub.s32 (!%p144_p10), 1, %v211_v5  ;;  %v240_v12 = vsub.s32 (!%p144_p10), 5, %v211_v5  ;;  %s1101_s20 = scalar_lea.vmem (!%p144_p10), [#allocation3], %s677_s18 }
  0x15   : > { %199 = vst.msk [vmem:[%s1101_s20] sm:$0xff] (!%p144_p10), %vm198_vm5, %v836_v0 }
  0x16   : > { %s174_s23 = scalar_select %p173_p11, %s826_s12, 1 }
  0x18   : > { %s678_s24 = sshll.u32 %s174_s23, 3  ;;  %s682_s23 = sshll.u32 %s826_s12, 7 }
  0x19   : > { %s176_s27 = scalar_lea.vmem %s1177_s0, %s678_s24  ;;  %s185_s30 = scalar_lea.vmem %s1178_s1, %s678_s24 }
  0x1a   : > { %v202_v2 = vld [vmem:[%s176_s27] sm:$0xff]  ;;  %s587_s24 = sshll.u32 %s1101_s20, 4  ;;  %s1126_s27 = scalar_lea.hbm %s1179_s2, %s682_s23  ;;  %s1128_s24 = int_to_ptr.vmem [resolvable:$true] %s587_s24 }
  0x1b   : > { %206 = vperm.xlu0 %751, %v202_v2   ;;  %255 = vperm.xlu1 %753, %v202_v2   ;;  %v203_v8 = vld [vmem:[%s185_s30] sm:$0x77]  ;;  %s756_s29 = scalar_lea.vmem %s1128_s24, 128  ;;  %s846_s12 = smov [#allocation3]  }
  0x1c   : > { %v213_v13 = vrot.slane %v203_v8, %v212_v6  ;;  %v217_v14 = vrot.slane %v203_v8, %v216_v7  ;;  %v261_v15 = vrot.slane %v203_v8, %v260_v9  ;;  %v265_v16 = vrot.slane %v203_v8, %v264_v10  ;;  %p757_p12 = scmp.ne.s32.totalorder %s1128_s24, %s756_s29  ;;  %s760_s30 = sshll.u32 %s846_s12, 4  ;;  %s761_s30 = int_to_ptr.vmem [resolvable:$false] %s760_s30 }
  0x1d   : > { %v237_v17 = vrot.slane %v203_v8, %v236_v11  ;;  %v241_v18 = vrot.slane %v203_v8, %v240_v12  ;;  %p763_p1 = scmp.lt.s32.totalorder %s1128_s24, %s761_s30 }
  0x1e   : > { %v223_v19 = vrot.slane %v213_v13, %v212_v6  ;;  %v227_v20 = vrot.slane %v217_v14, %v212_v6  ;;  %v271_v22 = vrot.slane %v261_v15, %v260_v9  ;;  %v275_v23 = vrot.slane %v265_v16, %v260_v9  ;;  %p758_p13 = pnand %p757_p12, %p902_p4 }
  0x1f   : > { %752 = vset.pattern.permute.xlu0 %v838_v3  ;;  %755 = vset.pattern.permute.xlu1 %v836_v0  ;;  %v247_v25 = vrot.slane %v237_v17, %v236_v11  ;;  %v251_v26 = vrot.slane %v241_v18, %v236_v11 }
  0x20   : > { %231 = vperm.xlu0 %752, %v202_v2   ;;  %p759_p0 = pneg %p758_p13 }
  0x24   : > { %754 = vset.pattern.permute.xlu0 %v836_v0 }
  0x9a   : > { %v207_v21 = vpop.permute.xlu0 %206  ;;  %v256_v24 = vpop.permute.xlu1 %255 }
  0x9b   : > { %v228_v27 = vsub.f32 %v207_v21, %v223_v19  ;;  %v229_v28 = vsub.f32 %v207_v21, %v227_v20  ;;  %v276_v29 = vsub.f32 %v256_v24, %v271_v22  ;;  %v277_v30 = vsub.f32 %v256_v24, %v275_v23  ;;  %v955_v19 = vld [vmem:[#allocation2] sm:$0xff] }
  0x9d   : > { %v278_v34 = vmul.f32 %v228_v27, %v228_v27  ;;  %v279_v35 = vmul.f32 %v229_v28, %v229_v28  ;;  %v284_v38 = vmul.f32 %v276_v29, %v276_v29  ;;  %v285_v39 = vmul.f32 %v277_v30, %v277_v30 }
  0x9f   : > { %v232_v31 = vpop.permute.xlu0 %231 }
  0xa0   : > { %v252_v32 = vsub.f32 %v232_v31, %v247_v25  ;;  %v253_v33 = vsub.f32 %v232_v31, %v251_v26 }
  0xa2   : > { %v280_v36 = vmul.f32 %v252_v32, %v252_v32  ;;  %v281_v37 = vmul.f32 %v253_v33, %v253_v33  ;;  %v961_v33 = vand.u32 127, %v188_v4 }
  0xa4   : > { %v282_v40 = vadd.f32 %v280_v36, %v278_v34  ;;  %v283_v41 = vadd.f32 %v281_v37, %v279_v35 }
  0xa6   : > { %v931_v42 = vadd.f32 %v284_v38, %v282_v40  ;;  %v933_v43 = vadd.f32 %v285_v39, %v283_v41  ;;  %v970_v39 = vadd.s32 128, %v961_v33 }
  0xa8   : > { %vm288_vm1 = vcmp.le.f32.partialorder %v931_v42, 0.16  ;;  %vm289_vm2 = vcmp.le.f32.partialorder %v933_v43, 0.16 }
  0xa9   : > { %v939_v44 = vsel %vm288_vm1, 1, %v836_v0  ;;  %v946_v45 = vsel %vm289_vm2, 1, %v836_v0 }
  0xaa   : > { %292 = vrot.lane.b32.xlu1 %v939_v44, %s839_s3  ;;  %v364_v21 = vadd.s32 %v946_v45, %v939_v44 }
  0xac   : > { %v365_v22 = vand.u32 65535, %v364_v21  ;;  %v366_v24 = vshrl.u32 %v364_v21, 16 }
  0xae   : > { %294 = vrot.lane.b32.xlu1 %v946_v45, %s839_s3  ;;  %v367_v23 = vcvt.s32.f32 %v365_v22  ;;  %v368_v25 = vcvt.s32.f32 %v366_v24  ;;  %s762_s3 = scalar_lea.vmem %s761_s30, 256 }
  0xaf   : > { %p764_p2 = scmp.lt.s32.totalorder %s762_s3, %s756_s29 }
  0xb1   : > { %p765_p3 = por %p764_p2, %p763_p1 }
  0xb3   : > { %p766_p5 = pnand %p765_p3, %p759_p0 }
 0x11c   : > { %v293_v46 = vpop.permute.xlu1 %292 }
 0x11d   : > { %v298_v47 = vsel %vm200_vm0, 0, %v293_v46 }
 0x11e   : > { %v299_v48 = vadd.s32 %v298_v47, %v939_v44 }
 0x120   : > { %301 = vrot.lane.b32.xlu0 %v299_v48, %s840_s4  ;;  %v295_v49 = vpop.permute.xlu1 %294 }
 0x121   : > { %v297_v50 = vsel %vm200_vm0, %v293_v46, %v295_v49 }
 0x122   : > { %v300_v51 = vadd.s32 %v297_v50, %v946_v45 }
 0x124   : > { %303 = vrot.lane.b32.xlu1 %v300_v51, %s840_s4 }
 0x192   : > { %v302_v52 = vpop.permute.xlu0 %301 }
 0x193   : > { %v307_v53 = vsel %vm305_vm3, 0, %v302_v52 }
 0x194   : > { %v308_v54 = vadd.s32 %v307_v53, %v299_v48 }
 0x196   : > { %310 = vrot.lane.b32.xlu0 %v308_v54, %s841_s5  ;;  %v304_v55 = vpop.permute.xlu1 %303 }
 0x197   : > { %v306_v56 = vsel %vm305_vm3, %v302_v52, %v304_v55 }
 0x198   : > { %v309_v57 = vadd.s32 %v306_v56, %v300_v51 }
 0x19a   : > { %312 = vrot.lane.b32.xlu1 %v309_v57, %s841_s5 }
 0x208   : > { %v311_v58 = vpop.permute.xlu0 %310 }
 0x209   : > { %v316_v59 = vsel %vm314_vm4, 0, %v311_v58 }
 0x20a   : > { %v317_v60 = vadd.s32 %v316_v59, %v308_v54 }
 0x20c   : > { %319 = vrot.lane.b32.xlu0 %v317_v60, %s842_s6  ;;  %v313_v61 = vpop.permute.xlu1 %312 }
 0x20d   : > { %v315_v62 = vsel %vm314_vm4, %v311_v58, %v313_v61 }
 0x20e   : > { %v318_v63 = vadd.s32 %v315_v62, %v309_v57 }
 0x210   : > { %321 = vrot.lane.b32.xlu1 %v318_v63, %s842_s6 }
 0x27e   : > { %v320_v1 = vpop.permute.xlu0 %319 }
 0x27f   : > { %v325_v2 = vsel %vm198_vm5, 0, %v320_v1 }
 0x280   : > { %v326_v3 = vadd.s32 %v325_v2, %v317_v60 }
 0x282   : > { %328 = vrot.lane.b32.xlu0 %v326_v3, %s843_s7  ;;  %v322_v5 = vpop.permute.xlu1 %321 }
 0x283   : > { %v324_v6 = vsel %vm198_vm5, %v320_v1, %v322_v5 }
 0x284   : > { %v327_v7 = vadd.s32 %v324_v6, %v318_v63 }
 0x286   : > { %330 = vrot.lane.b32.xlu1 %v327_v7, %s843_s7 }
 0x2f4   : > { %v329_v8 = vpop.permute.xlu0 %328 }
 0x2f5   : > { %v334_v9 = vsel %vm332_vm6, 0, %v329_v8 }
 0x2f6   : > { %v335_v10 = vadd.s32 %v334_v9, %v326_v3 }
 0x2f8   : > { %337 = vrot.lane.b32.xlu0 %v335_v10, %s844_s8  ;;  %v331_v11 = vpop.permute.xlu1 %330 }
 0x2f9   : > { %v333_v12 = vsel %vm332_vm6, %v329_v8, %v331_v11 }
 0x2fa   : > { %v336_v13 = vadd.s32 %v333_v12, %v327_v7 }
 0x2fc   : > { %339 = vrot.lane.b32.xlu1 %v336_v13, %s844_s8 }
 0x36a   : > { %v338_v14 = vpop.permute.xlu0 %337 }
 0x36b   : > { %v343_v15 = vsel %vm341_vm7, 0, %v338_v14 }
 0x36c   : > { %v344_v16 = vadd.s32 %v343_v15, %v335_v10 }
 0x36e   : > { %346 = vrot.lane.b32.xlu0 %v344_v16, %s845_s15  ;;  %v340_v17 = vpop.permute.xlu1 %339 }
 0x36f   : > { %v342_v18 = vsel %vm341_vm7, %v338_v14, %v340_v17  ;;  %v379_v14 = vld [vmem:[%s1101_s20] sm:$0xff] }
 0x370   : > { %v345_v20 = vadd.s32 %v342_v18, %v336_v13 }
 0x372   : > { %360 = vperm.xlu0 %754, %v955_v19   ;;  %348 = vrot.lane.b32.xlu1 %v345_v20, %s845_s15 }
 0x391   : > { %369 = vadd.xlane.f32.xlu0 %v367_v23 }
 0x396   : > { %371 = vadd.xlane.f32.xlu1 %v368_v25 }
 0x3e0   : > { %v347_v26 = vpop.permute.xlu0 %346 }
 0x3e1   : > { %v352_v29 = vsel %vm350_vm8, 0, %v347_v26 }
 0x3e2   : > { %v353_v31 = vadd.s32 %v352_v29, %v344_v16 }
 0x3e4   : > { %v349_v27 = vpop.permute.xlu1 %348  ;;  %v357_v34 = vsub.s32 %v353_v31, %v939_v44 }
 0x3e5   : > { %v351_v28 = vsel %vm350_vm8, %v347_v26, %v349_v27 }
 0x3e6   : > { %v354_v30 = vadd.s32 %v351_v28, %v345_v20 }
 0x3e8   : > { %v355_v32 = vadd.s32 %v354_v30, %v353_v31 }
 0x3ea   : > { %v358_v35 = vsub.s32 %v355_v32, %v946_v45 }
 0x3f1   : > { %v361_v36 = vpop.permute.xlu0 %360 }
 0x3f2   : > { %v965_v37 = vadd.s32 %v361_v36, %v357_v34  ;;  %v967_v38 = vadd.s32 %v361_v36, %v358_v35 }
 0x3f4   : > { %vm380_vm9 = vcmp.eq.s32.totalorder %v965_v37, 0  ;;  %vm381_vm10 = vcmp.eq.s32.totalorder %v967_v38, 0  ;;  %vm402_vm11 = vcmp.eq.s32.totalorder %v965_v37, 1  ;;  %vm403_vm13 = vcmp.eq.s32.totalorder %v967_v38, 1 }
 0x3f5   : > { %vm382_vm12 = vmand %vm288_vm1, %vm380_vm9  ;;  %vm424_vm15 = vcmp.eq.s32.totalorder %v965_v37, 2  ;;  %vm425_vm4 = vcmp.eq.s32.totalorder %v967_v38, 2  ;;  %vm446_vm7 = vcmp.eq.s32.totalorder %v965_v37, 3  ;;  %vm447_vm9 = vcmp.eq.s32.totalorder %v967_v38, 3 }
 0x3f6   : > { %vm383_vm14 = vmand %vm289_vm2, %vm381_vm10  ;;  %v384_v4 = vsel %vm382_vm12, %v961_v33, 0  ;;  %vm468_vm10 = vcmp.eq.s32.totalorder %v965_v37, 4 }
 0x3f7   : > { %v385_v40 = vsel %vm383_vm14, %v970_v39, 0  ;;  %vm404_vm3 = vmand %vm288_vm1, %vm402_vm11 }
 0x3f8   : > { %v386_v41 = vadd.s32 %v385_v40, %v384_v4  ;;  %vm405_vm6 = vmand %vm289_vm2, %vm403_vm13  ;;  %v406_v44 = vsel %vm404_vm3, %v961_v33, 0  ;;  %vm469_vm13 = vcmp.eq.s32.totalorder %v967_v38, 4 }
 0x3f9   : > { %v407_v45 = vsel %vm405_vm6, %v970_v39, 0  ;;  %vm993_vm8 = vmand %vm288_vm1, %vm424_vm15  ;;  %vm491_vm6 = vcmp.eq.s32.totalorder %v967_v38, 5 }
 0x3fa   : > { %v388_v47 = vshrl.u32 %v386_v41, 16  ;;  %v387_v48 = vand.u32 65535, %v386_v41  ;;  %v408_v49 = vadd.s32 %v407_v45, %v406_v44  ;;  %vm427_vm11 = vmand %vm289_vm2, %vm425_vm4  ;;  %v428_v50 = vsel %vm993_vm8, %v961_v33, 0 }
 0x3fb   : > { %v429_v51 = vsel %vm427_vm11, %v970_v39, 0  ;;  %vm1007_vm12 = vmand %vm288_vm1, %vm446_vm7  ;;  %vm490_vm4 = vcmp.eq.s32.totalorder %v965_v37, 5  ;;  %vm512_vm8 = vcmp.eq.s32.totalorder %v965_v37, 6 }
 0x3fc   : > { %v390_v53 = vcvt.s32.f32 %v388_v47  ;;  %v389_v54 = vcvt.s32.f32 %v387_v48  ;;  %v410_v55 = vshrl.u32 %v408_v49, 16  ;;  %v409_v56 = vand.u32 65535, %v408_v49  ;;  %vm449_vm14 = vmand %vm289_vm2, %vm447_vm9 }
 0x3fd   : > { %v430_v57 = vadd.s32 %v429_v51, %v428_v50  ;;  %v450_v58 = vsel %vm1007_vm12, %v961_v33, 0  ;;  %v451_v59 = vsel %vm449_vm14, %v970_v39, 0  ;;  %vm1022_vm15 = vmand %vm288_vm1, %vm468_vm10  ;;  %vm513_vm10 = vcmp.eq.s32.totalorder %v967_v38, 6 }
 0x3fe   : > { %393 = vadd.xlane.f32.xlu1 %v390_v53  ;;  %391 = vadd.xlane.f32.xlu0 %v389_v54  ;;  %vm1028_vm3 = vmand %vm289_vm2, %vm469_vm13  ;;  %v412_v62 = vcvt.s32.f32 %v410_v55  ;;  %v411_v63 = vcvt.s32.f32 %v409_v56  ;;  %v452_v1 = vadd.s32 %v451_v59, %v450_v58  ;;  %v472_v5 = vsel %vm1022_vm15, %v961_v33, 0 }
 0x3ff   : > { %v432_v2 = vshrl.u32 %v430_v57, 16  ;;  %v431_v3 = vand.u32 65535, %v430_v57  ;;  %v473_v6 = vsel %vm1028_vm3, %v970_v39, 0  ;;  %vm1042_vm7 = vmand %vm288_vm1, %vm490_vm4  ;;  %vm534_vm13 = vcmp.eq.s32.totalorder %v965_v37, 7 }
 0x400   : > { %vm1049_vm9 = vmand %vm289_vm2, %vm491_vm6  ;;  %v454_v9 = vshrl.u32 %v452_v1, 16  ;;  %v453_v10 = vand.u32 65535, %v452_v1  ;;  %v474_v11 = vadd.s32 %v473_v6, %v472_v5  ;;  %v494_v15 = vsel %vm1042_vm7, %v961_v33, 0 }
 0x401   : > { %v434_v12 = vcvt.s32.f32 %v432_v2  ;;  %v433_v13 = vcvt.s32.f32 %v431_v3  ;;  %vm1056_vm11 = vmand %vm288_vm1, %vm512_vm8  ;;  %v495_v16 = vsel %vm1049_vm9, %v970_v39, 0  ;;  %vm535_vm14 = vcmp.eq.s32.totalorder %v967_v38, 7 }
 0x402   : > { %415 = vadd.xlane.f32.xlu1 %v412_v62  ;;  %413 = vadd.xlane.f32.xlu0 %v411_v63  ;;  %vm1068_vm12 = vmand %vm289_vm2, %vm513_vm10  ;;  %v456_v18 = vcvt.s32.f32 %v454_v9  ;;  %v455_v20 = vcvt.s32.f32 %v453_v10  ;;  %v476_v21 = vshrl.u32 %v474_v11, 16  ;;  %v475_v22 = vand.u32 65535, %v474_v11 }
 0x403   : > { %v496_v23 = vadd.s32 %v495_v16, %v494_v15  ;;  %v516_v24 = vsel %vm1056_vm11, %v961_v33, 0  ;;  %v517_v25 = vsel %vm1068_vm12, %v970_v39, 0  ;;  %vm1082_vm15 = vmand %vm288_vm1, %vm534_vm13  ;;  %vm421_vm1 = vcmp.eq.s32.totalorder %v961_v33, 1 }
 0x404   : > { %vm1088_vm3 = vmand %vm289_vm2, %vm535_vm14  ;;  %v518_v28 = vadd.s32 %v517_v25, %v516_v24  ;;  %v478_v29 = vcvt.s32.f32 %v476_v21  ;;  %v477_v30 = vcvt.s32.f32 %v475_v22  ;;  %v538_v42 = vsel %vm1082_vm15, %v961_v33, 0 }
 0x405   : > { %v498_v31 = vshrl.u32 %v496_v23, 16  ;;  %v497_v32 = vand.u32 65535, %v496_v23  ;;  %v539_v34 = vsel %vm1088_vm3, %v970_v39, 0  ;;  %vm443_vm2 = vcmp.eq.s32.totalorder %v961_v33, 2 }
 0x406   : > { %437 = vadd.xlane.f32.xlu1 %v434_v12  ;;  %435 = vadd.xlane.f32.xlu0 %v433_v13  ;;  %v520_v43 = vshrl.u32 %v518_v28, 16  ;;  %v519_v37 = vand.u32 65535, %v518_v28  ;;  %v540_v38 = vadd.s32 %v539_v34, %v538_v42  ;;  %vm465_vm4 = vcmp.eq.s32.totalorder %v961_v33, 3 }
 0x407   : > { %v500_v35 = vcvt.s32.f32 %v498_v31  ;;  %v499_v36 = vcvt.s32.f32 %v497_v32  ;;  %vm487_vm6 = vcmp.eq.s32.totalorder %v961_v33, 4  ;;  %vm509_vm7 = vcmp.eq.s32.totalorder %v961_v33, 5 }
 0x408   : > { %v522_v4 = vcvt.s32.f32 %v520_v43  ;;  %v521_v39 = vcvt.s32.f32 %v519_v37  ;;  %v542_v40 = vshrl.u32 %v540_v38, 16  ;;  %v541_v41 = vand.u32 65535, %v540_v38 }
 0x409   : > { %vm531_vm8 = vcmp.eq.s32.totalorder %v961_v33, 6  ;;  %vm553_vm9 = vcmp.eq.s32.totalorder %v961_v33, 7 }
 0x40a   : > { %459 = vadd.xlane.f32.xlu1 %v456_v18  ;;  %457 = vadd.xlane.f32.xlu0 %v455_v20  ;;  %v544_v44 = vcvt.s32.f32 %v542_v40  ;;  %v543_v45 = vcvt.s32.f32 %v541_v41 }
 0x40e   : > { %481 = vadd.xlane.f32.xlu1 %v478_v29  ;;  %479 = vadd.xlane.f32.xlu0 %v477_v30 }
 0x412   : > { %503 = vadd.xlane.f32.xlu1 %v500_v35  ;;  %501 = vadd.xlane.f32.xlu0 %v499_v36 }
 0x416   : > { %525 = vadd.xlane.f32.xlu1 %v522_v4  ;;  %523 = vadd.xlane.f32.xlu0 %v521_v39 }
 0x41a   : > { %547 = vadd.xlane.f32.xlu1 %v544_v44  ;;  %545 = vadd.xlane.f32.xlu0 %v543_v45 }
 0x41e   : > { %v370_v46 = vpop.xlane.xlu0 %369 }
 0x41f   : > { %v373_v49 = vcvt.f32.s32 %v370_v46 }
 0x423   : > { %v372_v47 = vpop.xlane.xlu1 %371 }
 0x424   : > { %v374_v48 = vcvt.f32.s32 %v372_v47 }
 0x426   : > { %v375_v50 = vshll.u32 %v374_v48, 16 }
 0x428   : > { %v376_v51 = vadd.s32 %v375_v50, %v373_v49 }
 0x42a   : > { %v377_v0 = vadd.s32 %v376_v51, %v955_v19 }
 0x42c   : > { %378 = vst.msk [vmem:[#allocation2] sm:$0xff] %vm200_vm0, %v377_v0  ;;  %vm399_vm0 = vcmp.eq.s32.totalorder %v961_v33, 0 }
 0x433   : > { %v560_v52 = vld [vmem:[#allocation2] sm:$0xff] }
 0x434   : > { %562 = vperm.xlu1 %755, %v560_v52  }
 0x48b   : > { %v394_v53 = vpop.xlane.xlu1 %393  ;;  %v392_v54 = vpop.xlane.xlu0 %391 }
 0x48c   : > { %v396_v57 = vcvt.f32.s32 %v394_v53  ;;  %v395_v2 = vcvt.f32.s32 %v392_v54 }
 0x48e   : > { %v397_v61 = vshll.u32 %v396_v57, 16 }
 0x48f   : > { %v416_v55 = vpop.xlane.xlu1 %415  ;;  %v414_v56 = vpop.xlane.xlu0 %413 }
 0x490   : > { %v418_v60 = vcvt.f32.s32 %v416_v55  ;;  %v398_v5 = vadd.s32 %v397_v61, %v395_v2  ;;  %v417_v6 = vcvt.f32.s32 %v414_v56 }
 0x492   : > { %v419_v3 = vshll.u32 %v418_v60, 16  ;;  %v400_v15 = vsel %vm399_vm0, %v398_v5, 0 }
 0x493   : > { %v438_v58 = vpop.xlane.xlu1 %437  ;;  %v436_v59 = vpop.xlane.xlu0 %435  ;;  %v401_v26 = vadd.s32 %v400_v15, %v379_v14 }
 0x494   : > { %v440_v62 = vcvt.f32.s32 %v438_v58  ;;  %v420_v10 = vadd.s32 %v419_v3, %v417_v6  ;;  %v439_v11 = vcvt.f32.s32 %v436_v59 }
 0x496   : > { %v441_v7 = vshll.u32 %v440_v62, 16  ;;  %v422_v22 = vsel %vm421_vm1, %v420_v10, 0 }
 0x497   : > { %v460_v63 = vpop.xlane.xlu1 %459  ;;  %v458_v1 = vpop.xlane.xlu0 %457  ;;  %v423_v31 = vadd.s32 %v422_v22, %v401_v26 }
 0x498   : > { %v462_v19 = vcvt.f32.s32 %v460_v63  ;;  %v442_v16 = vadd.s32 %v441_v7, %v439_v11  ;;  %v461_v17 = vcvt.f32.s32 %v458_v1 }
 0x49a   : > { %v463_v12 = vshll.u32 %v462_v19, 16  ;;  %v444_v27 = vsel %vm443_vm2, %v442_v16, 0 }
 0x49b   : > { %v482_v8 = vpop.xlane.xlu1 %481  ;;  %v480_v9 = vpop.xlane.xlu0 %479  ;;  %v445_v36 = vadd.s32 %v444_v27, %v423_v31 }
 0x49c   : > { %v484_v13 = vcvt.f32.s32 %v482_v8  ;;  %v464_v23 = vadd.s32 %v463_v12, %v461_v17  ;;  %v483_v24 = vcvt.f32.s32 %v480_v9 }
 0x49e   : > { %v485_v18 = vshll.u32 %v484_v13, 16  ;;  %v466_v34 = vsel %vm465_vm4, %v464_v23, 0 }
 0x49f   : > { %v504_v20 = vpop.xlane.xlu1 %503  ;;  %v502_v21 = vpop.xlane.xlu0 %501  ;;  %v467_v39 = vadd.s32 %v466_v34, %v445_v36 }
 0x4a0   : > { %v506_v25 = vcvt.f32.s32 %v504_v20  ;;  %v486_v28 = vadd.s32 %v485_v18, %v483_v24  ;;  %v505_v30 = vcvt.f32.s32 %v502_v21 }
 0x4a2   : > { %v507_v29 = vshll.u32 %v506_v25, 16  ;;  %v488_v37 = vsel %vm487_vm6, %v486_v28, 0 }
 0x4a3   : > { %v526_v32 = vpop.xlane.xlu1 %525  ;;  %v524_v42 = vpop.xlane.xlu0 %523  ;;  %v489_v47 = vadd.s32 %v488_v37, %v467_v39 }
 0x4a4   : > { %v508_v43 = vadd.s32 %v507_v29, %v505_v30  ;;  %v528_v35 = vcvt.f32.s32 %v526_v32  ;;  %v527_v4 = vcvt.f32.s32 %v524_v42 }
 0x4a6   : > { %v529_v38 = vshll.u32 %v528_v35, 16  ;;  %v510_v44 = vsel %vm509_vm7, %v508_v43, 0 }
 0x4a7   : > { %v548_v40 = vpop.xlane.xlu1 %547  ;;  %v546_v41 = vpop.xlane.xlu0 %545  ;;  %v511_v51 = vadd.s32 %v510_v44, %v489_v47 }
 0x4a8   : > { %v530_v45 = vadd.s32 %v529_v38, %v527_v4  ;;  %v550_v46 = vcvt.f32.s32 %v548_v40  ;;  %v549_v50 = vcvt.f32.s32 %v546_v41 }
 0x4aa   : > { %v532_v48 = vsel %vm531_vm8, %v530_v45, 0  ;;  %v551_v49 = vshll.u32 %v550_v46, 16 }
 0x4ab   : > { %v533_v52 = vadd.s32 %v532_v48, %v511_v51 }
 0x4ac   : > { %v552_v0 = vadd.s32 %v551_v49, %v549_v50 }
 0x4ae   : > { %v554_v53 = vsel %vm553_vm9, %v552_v0, 0 }
 0x4af   : > { %v555_v54 = vadd.s32 %v554_v53, %v533_v52 }
 0x4b1   : > { %556 = vst.msk [vmem:[%s1101_s20] sm:$0xff] %vm198_vm5, %v555_v54 }
 0x4b3   : > { %v563_v55 = vpop.permute.xlu1 %562 }
 0x4b4   : > { %vm564_vm10 = vcmp.lt.s32.totalorder %v961_v33, %v563_v55 }
 0x4b8   : > { %v565_v56 = vld [vmem:[%s1101_s20] sm:$0xff] }
 0x4b9   : > { %v566_v57 = vsel %vm564_vm10, %v565_v56, 256 }
 0x4ba   : > { %569 = vperm.xlu0 %754, %v566_v57   ;;  %vm567_vm11 = vcmp.eq.s32.totalorder %v566_v57, 256 }
 0x539   : > { %v570_v58 = vpop.permute.xlu0 %569 }
 0x53a   : > { %v571_v59 = vsel %vm567_vm11, %v570_v58, %v566_v57 }
 0x53b   : > { %572 = vst.msk [vmem:[%s1101_s20] sm:$0xff] %vm198_vm5, %v571_v59 }
 0x53c   : > { %769 = shalt.err (!%p766_p5)
}
 0x53d   : > { %s770_s4 = scalar_lea.hbm %s1126_s27, 128  ;;  %s774_s7 = scalar_lea.hbm %s1179_s2, 256 }
 0x53e   : > { %p771_p6 = scmp.ne.s32.totalorder %s1126_s27, %s770_s4  ;;  %p775_p10 = scmp.lt.u32.totalorder %s1126_s27, %s1179_s2 }
 0x53f   : > { %p776_p11 = scmp.lt.u32.totalorder %s774_s7, %s770_s4  ;;  %p778_p13 = scmp.lt.u32.totalorder %s770_s4, %s1126_s27 }
 0x540   : > { %p772_p7 = pnand %p771_p6, %p902_p4 }
 0x541   : > { %p777_p12 = por %p776_p11, %p775_p10 }
 0x542   : > { %p773_p9 = pneg %p772_p7 }
 0x543   : > { %p779_p0 = por %p778_p13, %p777_p12 }
 0x545   : > { %p780_p1 = pnand %p779_p0, %p773_p9 }
 0x547   : > { %783 = shalt.err (!%p780_p1)
}
 0x548   : > { %686 = dma.vmem_to_hbm [thread:$0]  (%p902_p4), %s1128_s24, 128, %s1126_s27, %s574_s28  }
 0x549 PF: > { %p692_p2 = scmp.ge.s32.totalorder %s834_s14, 2  ;;  %s599_s16 = sand.u32 1, %s814_s9  }
 0x54a   : > { %s600_s18 = scalar_lea.sflag [#allocation4], %s599_s16 }
 0x54b   : > { %p689_p3 = pnand %p692_p2, %p909_p8 }
 0x54d   : > { %809 = dma.done.wait (!%p689_p3), %s600_s18, 128  }
 0x54e   : > { %811 = vsyncadd (!%p689_p3), %s600_s18, 4294967168  ;;  %s15_s14 = sadd.s32 1, %s834_s14   ;;  %s1202_s9 = smov %s818_s10 }
 0x54f   : > { %p12_p5 = scmp.ge.s32.totalorder %s15_s14, 4   ;;  %s1203_s10 = smov %s822_s11 }
 0x550   : > { %s1204_s11 = smov %s915_s22  ;;  %s1205_s12 = smov %s830_s13 }
 0x551   : > { %s1206_s13 = smov %s1208_s17  ;;  %14 = sbr.rel (!%p12_p5) target bundleno = 4 (0x4), region = 74 }
 0x558   :  { %605 = vsyncpa [#allocation4], 1 }
 0x559   :  { %607 = vsyncpa [#allocation4 + $0x1], 1 }

</bundles_post_ra>
